<compile_context>
chip_gen: v7x
topology: tpu7x:2x2x1
jax: 0.10.0
libtpu: 0.0.40
codegen_flags: <defaults>
</compile_context>

<pallas_src>
import functools

import jax
import jax.numpy as jnp
from jax import lax
from jax.experimental import pallas as pl
from jax.experimental.pallas import tpu as pltpu

_LANES = 128  # f32 vreg lane width; kernel assumes 4 * hidden == 128 (gates fill one vreg)


# ----------------------------------------------------------------------------- roll probe
def _roll_probe_kernel(x_ref, o_ref):
    o_ref[...] = pltpu.roll(x_ref[...], 32, axis=1)


@functools.lru_cache(maxsize=None)
def _roll_down_shifts():
    """Static shifts s.t. pltpu.roll(x, shift, axis=-1)[..., j] == x[..., j + delta]
    for delta in (32, 64, 96). Determined once with a tiny probe kernel so the main
    kernel is robust to the rotate-direction convention."""
    lane_idx = jnp.broadcast_to(jnp.arange(_LANES, dtype=jnp.float32), (8, _LANES))
    rolled = pl.pallas_call(
        _roll_probe_kernel,
        out_shape=jax.ShapeDtypeStruct((8, _LANES), jnp.float32),
        in_specs=[pl.BlockSpec(memory_space=pltpu.MemorySpace.VMEM)],
        out_specs=pl.BlockSpec(memory_space=pltpu.MemorySpace.VMEM),
    )(lane_idx)
    v = int(jax.device_get(rolled[0, 0]))
    assert v in (32, 96), f"unexpected roll probe value: {v}"
    return {32: v, 64: 64, 96: _LANES - v}


# ----------------------------------------------------------------------------- LSTM kernel
def _lstm_kernel(shift_f, shift_g, shift_o,
                 x_ref, wih_ref, whh_ref, h_out_ref, c_out_ref, xw_scr):
    """Whole-sequence single-layer LSTM; h/c carried as full-width (B,128) vreg values."""
    batch, width = h_out_ref.shape                 # (8, 128)
    n_steps = x_ref.shape[0] // batch

    # Hoisted input projection (one big MXU op, off the serial chain). Gate biases ride in
    # as the weight row matched to the constant-1 column appended to x:
    #   xw[t*B + b, :] = x[b, t, :] @ W_ih + (b_i* + b_h*).
    xw_scr[...] = jnp.dot(x_ref[...], wih_ref[...], preferred_element_type=jnp.float32)

    def step(t, carry):
        h, c = carry                               # (B, 128); lanes [0:H) are the real state
        base = pl.multiple_of(t * batch, batch)
        gates = xw_scr[pl.ds(base, batch), :] + jnp.dot(
            h, whh_ref[...], preferred_element_type=jnp.float32)   # (B,128) = [i | f | g | o]
        sg = jax.nn.sigmoid(gates)                 # i, f, o valid in their lane blocks (EUP)
        th = jnp.tanh(gates)                       # g valid in lanes [2H:3H)          (EUP)
        f_al = pltpu.roll(sg, shift_f, axis=1)     # lanes [0:H) <- f                  (XLU)
        g_al = pltpu.roll(th, shift_g, axis=1)     # lanes [0:H) <- g                  (XLU)
        o_al = pltpu.roll(sg, shift_o, axis=1)     # lanes [0:H) <- o                  (XLU)
        c_new = f_al * c + sg * g_al               # valid in lanes [0:H); rest bounded junk
        h_new = o_al * jnp.tanh(c_new)             # junk lanes meet zero rows of W_hh later
        return h_new, c_new

    h0 = jnp.zeros((batch, width), jnp.float32)    # zero initial state (hidden=None)
    c0 = jnp.zeros((batch, width), jnp.float32)
    h_last, c_last = lax.fori_loop(0, n_steps, step, (h0, c0), unroll=True)

    # Lane-dense (B,128) stores; sliced back to (B,H) outside the kernel.
    h_out_ref[...] = h_last
    c_out_ref[...] = c_last


# ----------------------------------------------------------------------------- wrapper
def lstm_forward(x, params):
    """Pallas forward of the PyTorch LSTM module (num_layers=1, unidirectional, zero init).

    x: (batch, seq_len, input_size) float32.
    Returns (output, (h_n, c_n)) matching `LSTM.forward`: output == outputs[:, -1, :].
    """
    # TODO(synk): num_layers > 1, bidirectional=True and a caller-provided initial hidden
    # state (non-default code paths of the module) are not implemented in the kernel.
    batch, seq_len, in_size = x.shape
    hidden = params["W_hi"].shape[0]
    assert 4 * hidden == _LANES, "kernel assumes 4*hidden_size == 128 (one f32 vreg of gates)"
    assert batch % 8 == 0 and in_size < _LANES  # one spare column holds the bias constant

    # Combined gate weights (PyTorch Linear: y = x @ W.T + b), gate column order i, f, g, o.
    w_ih = jnp.concatenate([params["W_ii"].T, params["W_if"].T,
                            params["W_ig"].T, params["W_io"].T], axis=1)   # (C, 4H)
    w_hh = jnp.concatenate([params["W_hi"].T, params["W_hf"].T,
                            params["W_hg"].T, params["W_ho"].T], axis=1)   # (H, 4H)
    bias = jnp.concatenate([params["b_ii"] + params["b_hi"],
                            params["b_if"] + params["b_hf"],
                            params["b_ig"] + params["b_hg"],
                            params["b_io"] + params["b_ho"]])              # (4H,)

    # Zero-pad contraction dims to 128 (numerically free):
    #  * x columns / W_ih rows: in_size -> 128 so x loads are unmasked; column `in_size`
    #    of x is a constant 1 and the matching W_ih row carries the folded gate bias.
    #  * W_hh rows: hidden -> 128 so the full-width (B,128) hidden state (junk in lanes
    #    [H:128)) contributes nothing to the gate matmul.
    w_ih_p = (jnp.zeros((_LANES, 4 * hidden), jnp.float32)
              .at[:in_size].set(w_ih)
              .at[in_size].set(bias))
    w_hh_p = jnp.zeros((_LANES, 4 * hidden), jnp.float32).at[:hidden].set(w_hh)

    # Time-major, flattened, lane-padded input with the bias column: (S*B, 128).
    x_tm = jnp.swapaxes(x, 0, 1).reshape(seq_len * batch, in_size)
    x_p = (jnp.zeros((seq_len * batch, _LANES), jnp.float32)
           .at[:, :in_size].set(x_tm)
           .at[:, in_size].set(1.0))

    shifts = _roll_down_shifts()
    kernel = functools.partial(_lstm_kernel, shifts[32], shifts[64], shifts[96])

    vmem = pl.BlockSpec(memory_space=pltpu.MemorySpace.VMEM)
    h_pad, c_pad = pl.pallas_call(
        kernel,
        out_shape=(jax.ShapeDtypeStruct((batch, _LANES), jnp.float32),
                   jax.ShapeDtypeStruct((batch, _LANES), jnp.float32)),
        in_specs=[vmem, vmem, vmem],
        out_specs=(vmem, vmem),
        scratch_shapes=[pltpu.VMEM((seq_len * batch, 4 * hidden), jnp.float32)],
    )(x_p, w_ih_p, w_hh_p)

    h_last = h_pad[:, :hidden]
    c_last = c_pad[:, :hidden]
    return h_last, (h_last[None, :, :], c_last[None, :, :])


# ----------------------------------------------------------------------------- reference
def reference_forward(x, p):
    """Pure-JAX reference that mirrors the PyTorch LSTMCell/LSTM code literally."""
    batch, seq_len, _ = x.shape
    hidden = p["W_hi"].shape[0]
    h = jnp.zeros((batch, hidden), jnp.float32)
    c = jnp.zeros((batch, hidden), jnp.float32)
    outputs = []
    for t in range(seq_len):
        x_t = x[:, t, :]
        i = jax.nn.sigmoid(x_t @ p["W_ii"].T + p["b_ii"] + h @ p["W_hi"].T + p["b_hi"])
        f = jax.nn.sigmoid(x_t @ p["W_if"].T + p["b_if"] + h @ p["W_hf"].T + p["b_hf"])
        g = jnp.tanh(x_t @ p["W_ig"].T + p["b_ig"] + h @ p["W_hg"].T + p["b_hg"])
        o = jax.nn.sigmoid(x_t @ p["W_io"].T + p["b_io"] + h @ p["W_ho"].T + p["b_ho"])
        c = f * c + i * g
        h = o * jnp.tanh(c)
        outputs.append(h)
    return outputs[-1], (h[None, :, :], c[None, :, :])


# ----------------------------------------------------------------------------- demo / test
if __name__ == "__main__":
    BATCH, SEQ_LEN, IN_SIZE, HIDDEN = 8, 6, 26, 32

    key = jax.random.PRNGKey(0)
    keys = jax.random.split(key, 17)
    kit = iter(keys[:16])

    def linear_params(out_dim, in_dim):
        w = jax.random.normal(next(kit), (out_dim, in_dim), jnp.float32) * 0.1
        b = jax.random.normal(next(kit), (out_dim,), jnp.float32) * 0.1
        return w, b

    params = {}
    for gate in "ifgo":
        params[f"W_i{gate}"], params[f"b_i{gate}"] = linear_params(HIDDEN, IN_SIZE)
        params[f"W_h{gate}"], params[f"b_h{gate}"] = linear_params(HIDDEN, HIDDEN)

    x = jax.random.normal(keys[16], (BATCH, SEQ_LEN, IN_SIZE), jnp.float32)

    out, (h_n, c_n) = lstm_forward(x, params)
    out = jax.block_until_ready(out)

    ref_out, (ref_h, ref_c) = reference_forward(x, params)

    assert out.shape == (BATCH, HIDDEN)
    assert h_n.shape == (1, BATCH, HIDDEN) and c_n.shape == (1, BATCH, HIDDEN)
    assert jnp.allclose(out, ref_out, atol=1e-4, rtol=1e-4), "output mismatch vs reference"
    assert jnp.allclose(h_n, ref_h, atol=1e-4, rtol=1e-4), "h_n mismatch vs reference"
    assert jnp.allclose(c_n, ref_c, atol=1e-4, rtol=1e-4), "c_n mismatch vs reference"

    print("KERNEL_OK")
</pallas_src>

<mosaic_0001>
module attributes {stable_mosaic.version = 11 : i64} {
  func.func @_roll_probe_kernel(%arg0: memref<8x128xf32, #tpu.memory_space<vmem>>, %arg1: memref<8x128xf32, #tpu.memory_space<vmem>>) attributes {dimension_semantics = [], scalar_prefetch = 0 : i64, scratch_operands = 0 : i64, tpu.core_type = #tpu.core_type<tc>} {
    %c0 = arith.constant 0 : index
    %c0_0 = arith.constant 0 : index
    %0 = vector.load %arg0[%c0, %c0_0] : memref<8x128xf32, #tpu.memory_space<vmem>>, vector<8x128xf32>
    %c32_i32 = arith.constant 32 : i32
    %1 = tpu.dynamic_rotate %0 by %c32_i32 dim 1 : vector<8x128xf32>, i32 -> vector<8x128xf32>
    %c0_1 = arith.constant 0 : index
    %c0_2 = arith.constant 0 : index
    %2 = vector.load %arg1[%c0_1, %c0_2] : memref<8x128xf32, #tpu.memory_space<vmem>>, vector<8x128xf32>
    tpu.vector_store %arg1[%c0_1, %c0_2], %1 {strides = array<i32>} : memref<8x128xf32, #tpu.memory_space<vmem>>, vector<8x128xf32>,
    return
  }
}

</mosaic_0001>

<bundles_post_ra>
// kernel: tpu_custom_call.1
= control target key start
LH: loop header
LB: loop body
LE: loop exit
PB: predicated region body
PF: predicated region fallthrough
CT: control target
= control target key end

     0   :  { %6 = vsyncpa [#allocation3], 0  ;;  %s128_s0 = inlined_call_operand.hbm [shape: f32[8,128], index: 0, kind: input, shape index: {}]   ;;  %s129_s1 = inlined_call_operand.hbm [shape: f32[8,128], index: 1, kind: output, shape index: {}]  }
   0x1   :  { %7 = vsyncpa [#allocation4], 0  ;;  %s91_s6 = smov [#allocation2]   ;;  %s43_s10 = scalar_lea.hbm %s128_s0, 128 }
   0x2   :  { %s14_s7 = sshll.u32 %s91_s6, 4  ;;  %p44_p0 = scmp.ne.s32.totalorder %s128_s0, %s43_s10  ;;  %s15_s7 = int_to_ptr.vmem [resolvable:$true] %s14_s7 }
   0x3   :  { %p47_p1 = scmp.lt.u32.totalorder %s43_s10, %s128_s0 }
   0x5   :  { %p49_p2 = pnand %p47_p1, %p44_p0 }
   0x7   :  { %52 = shalt.err (!%p49_p2)
}
   0x8   :  { %s53_s15 = scalar_lea.vmem %s15_s7, 128  ;;  %p58_p4 = scmp.lt.s32.totalorder %s15_s7, %s15_s7 }
   0x9   :  { %p54_p3 = scmp.ne.s32.totalorder %s15_s7, %s53_s15  ;;  %p59_p5 = scmp.lt.s32.totalorder %s53_s15, %s53_s15 }
   0xb   :  { %p60_p6 = por %p59_p5, %p58_p4 }
   0xd   :  { %p61_p7 = pnand %p60_p6, %p54_p3 }
   0xf   :  { %64 = shalt.err (!%p61_p7)
}
  0x10   :  { %17 = dma.hbm_to_vmem [thread:$0]  %s128_s0, 128, %s15_s7, [#allocation3]  }
  0x11   :  { %87 = dma.done.wait [#allocation3], 128  }
  0x12   :  { %88 = vsyncadd [#allocation3], 4294967168  ;;  %v21_v0 = vld [vmem:[#allocation2] sm:$0xff]  ;;  %s92_s18 = smov 32   ;;  %s93_s19 = smov [#allocation5]  }
  0x13   :  { %22 = vrot.lane.b32.xlu0 %v21_v0, %s92_s18  ;;  %s31_s20 = sshll.u32 %s93_s19, 4  ;;  %s32_s20 = int_to_ptr.vmem [resolvable:$true] %s31_s20 }
  0x14   :  { %s65_s21 = scalar_lea.vmem %s32_s20, 128  ;;  %p70_p9 = scmp.lt.s32.totalorder %s32_s20, %s32_s20 }
  0x15   :  { %p66_p8 = scmp.ne.s32.totalorder %s32_s20, %s65_s21  ;;  %p71_p10 = scmp.lt.s32.totalorder %s65_s21, %s65_s21 }
  0x17   :  { %p72_p11 = por %p71_p10, %p70_p9 }
  0x19   :  { %p73_p12 = pnand %p72_p11, %p66_p8 }
  0x85   :  { %v23_v1 = vpop.permute.xlu0 %22 }
  0x86   :  { %24 = vst [vmem:[#allocation5] sm:$0xff] %v23_v1 }
  0x87   :  { %76 = shalt.err (!%p73_p12)
}
  0x88   :  { %s77_s0 = scalar_lea.hbm %s129_s1, 128 }
  0x89   :  { %p78_p13 = scmp.ne.s32.totalorder %s129_s1, %s77_s0  ;;  %p81_p0 = scmp.lt.u32.totalorder %s77_s0, %s129_s1 }
  0x8b   :  { %p83_p1 = pnand %p81_p0, %p78_p13 }
  0x8d   :  { %86 = shalt.err (!%p83_p1)
}
  0x8e   :  { %34 = dma.vmem_to_hbm [thread:$0]  %s32_s20, 128, %s129_s1, [#allocation4]  }
  0x8f   :  { %89 = dma.done.wait [#allocation4], 128  }
  0x90   :  { %90 = vsyncadd [#allocation4], 4294967168 }
  0x91   :  { %38 = vsyncpa [#allocation3], 1 }
  0x92   :  { %39 = vsyncpa [#allocation4], 1 }

</bundles_post_ra>
